<compile_context>
chip_gen: v5e
topology: v5e:2x2
jax: 0.10.0
libtpu: 0.0.40
codegen_flags: <defaults>
</compile_context>

<pallas_src>
import functools

import jax
import jax.numpy as jnp
from jax.experimental import pallas as pl
from jax.experimental.pallas import tpu as pltpu


def _ce_label_smooth_kernel(targets_ref, logits_ref, loss_ref, *,
                            epsilon, num_classes, true_n, tile_n,
                            tiles_per_part):
    p = pl.program_id(0)          # partition (megacore split on v7x)
    j = pl.program_id(1)          # batch-tile index within the partition

    # Output block is resident across j (the reduction axis) -> accumulator.
    @pl.when(j == 0)
    def _init():
        loss_ref[...] = jnp.zeros_like(loss_ref)

    # ---- per-tile math (temporaries are (TN, C) / (TN, 1)) ----
    x = logits_ref[...].astype(jnp.float32)                          # (TN, C)
    m = jnp.max(x, axis=1, keepdims=True)                            # (TN, 1)
    shifted = x - m                                                  # (TN, C)
    lse = jnp.log(jnp.sum(jnp.exp(shifted), axis=1, keepdims=True))  # (TN, 1)

    # Smoothed-label weights fused into a single weighted row reduction:
    #   loss_row = lse - sum_c(w_c * shifted_c)
    tgt = targets_ref[...]                                           # (TN,1) i32
    col = jax.lax.broadcasted_iota(jnp.int32, (tile_n, num_classes), 1)
    uni = epsilon / num_classes
    w = jnp.where(col == tgt, (1.0 - epsilon) + uni, uni)            # (TN, C)
    weighted = jnp.sum(w * shifted, axis=1, keepdims=True)           # (TN, 1)
    loss_rows = lse - weighted                                       # (TN, 1)

    # Mask rows past the true batch size using the *logical* tile index
    # (handles the partial last tile and duplicated clamped tail tiles).
    row_start = (p * tiles_per_part + j) * tile_n
    row_idx = row_start + jax.lax.broadcasted_iota(jnp.int32, (tile_n, 1), 0)
    loss_rows = jnp.where(row_idx < true_n, loss_rows, 0.0)

    # Accumulate this tile's partial sum (broadcast over the (1,8,128) block).
    loss_ref[...] += jnp.sum(loss_rows)


def _round_up(x, m):
    return ((x + m - 1) // m) * m


def cross_entropy_label_smooth(logits, targets, *, num_classes, epsilon,
                               num_partitions=2,
                               block_byte_budget=2 * 1024 * 1024):
    """JAX/Pallas equivalent of CrossEntropyLabelSmooth.forward.

    logits:  (N, C) float (kept in native dtype across the DMA)
    targets: (N,)   int class indices
    returns: scalar float32 loss
    """
    n, c = logits.shape
    assert c == num_classes
    assert n >= 1

    itemsize = jnp.dtype(logits.dtype).itemsize
    row_align = {4: 8, 2: 16, 1: 32}.get(itemsize, 8)   # sublane packing rule

    # Rows per tile: as many aligned rows as fit the per-block byte budget
    # (keeps 2-input double-buffering well under default scoped VMEM on all
    # generations, incl. v7x's smaller VMEM), capped at 1024 rows and at the
    # (aligned) full batch.
    bytes_per_row = max(1, c * itemsize)
    rows_fit = max(row_align, block_byte_budget // bytes_per_row)
    tile_n = max(row_align, (rows_fit // row_align) * row_align)
    tile_n = min(tile_n, 1024)
    tile_n = min(tile_n, _round_up(n, row_align))

    num_tiles = -(-n // tile_n)                           # ceil(n / tile_n)
    num_partitions = max(1, min(num_partitions, num_tiles))
    tiles_per_part = -(-num_tiles // num_partitions)      # ceil
    last_tile = num_tiles - 1

    targets_2d = targets.astype(jnp.int32).reshape(n, 1)

    kernel = functools.partial(
        _ce_label_smooth_kernel,
        epsilon=float(epsilon), num_classes=int(num_classes),
        true_n=int(n), tile_n=int(tile_n), tiles_per_part=int(tiles_per_part))

    # Clamp block indices that run past the last tile back onto it: the data
    # fetched for those duplicated tiles is fully masked in the kernel, so no
    # batch padding (and no HBM copy of the logits) is ever needed.
    def row_block(p, j):
        return (jnp.minimum(p * tiles_per_part + j, last_tile), 0)

    out = pl.pallas_call(
        kernel,
        out_shape=jax.ShapeDtypeStruct((num_partitions, 8, 128), jnp.float32),
        grid_spec=pltpu.PrefetchScalarGridSpec(
            num_scalar_prefetch=0,
            grid=(num_partitions, tiles_per_part),
            in_specs=[
                # targets: (TN, 1) int32, same row-block as the logits tile
                pl.BlockSpec((tile_n, 1), row_block),
                # logits: (TN, C) streamed tile (native dtype over the DMA)
                pl.BlockSpec((tile_n, c), row_block),
            ],
            # One lane-dense (8,128) accumulator block per partition; constant
            # across j -> resident accumulator, written back once per partition.
            out_specs=pl.BlockSpec((1, 8, 128), lambda p, j: (p, 0, 0)),
        ),
        compiler_params=pltpu.CompilerParams(
            dimension_semantics=("parallel", "arbitrary")),
    )(targets_2d, logits)

    # Final cross-partition add + mean(0).sum() normalization in plain JAX.
    return jnp.sum(out[:, 0, 0]) / jnp.float32(n)


def _reference(logits, targets, num_classes, epsilon):
    # Pure-JAX reference matching the PyTorch module.
    log_probs = jax.nn.log_softmax(logits.astype(jnp.float32), axis=1)
    one_hot = jax.nn.one_hot(targets, num_classes, dtype=jnp.float32)
    smooth = (1.0 - epsilon) * one_hot + epsilon / num_classes
    return jnp.sum(jnp.mean(-smooth * log_probs, axis=0))


if __name__ == "__main__":
    num_classes = 32
    epsilon = 0.1
    key = jax.random.PRNGKey(0)

    # Case 1: exact-fit batch (single tile, single partition).
    k1, k2, k3, k4, k5, k6 = jax.random.split(key, 6)
    logits_a = jax.random.normal(k1, (8, num_classes), dtype=jnp.float32)
    targets_a = jax.random.randint(k2, (8,), 0, num_classes, dtype=jnp.int32)
    loss_a = jax.block_until_ready(cross_entropy_label_smooth(
        logits_a, targets_a, num_classes=num_classes, epsilon=epsilon))
    ref_a = _reference(logits_a, targets_a, num_classes, epsilon)
    assert jnp.allclose(loss_a, ref_a, atol=1e-4, rtol=1e-5), (loss_a, ref_a)

    # Case 2: ragged batch (partial last block, masked tail rows).
    logits_b = jax.random.normal(k3, (13, num_classes), dtype=jnp.float32)
    targets_b = jax.random.randint(k4, (13,), 0, num_classes, dtype=jnp.int32)
    loss_b = jax.block_until_ready(cross_entropy_label_smooth(
        logits_b, targets_b, num_classes=num_classes, epsilon=epsilon))
    ref_b = _reference(logits_b, targets_b, num_classes, epsilon)
    assert jnp.allclose(loss_b, ref_b, atol=1e-4, rtol=1e-5), (loss_b, ref_b)

    # Case 3: multi-tile, two partitions, clamped duplicate tail tile
    # (tiny block budget forces tile_n = 8 -> 5 tiles split 3/2+dup).
    logits_c = jax.random.normal(k5, (40, num_classes), dtype=jnp.float32)
    targets_c = jax.random.randint(k6, (40,), 0, num_classes, dtype=jnp.int32)
    loss_c = jax.block_until_ready(cross_entropy_label_smooth(
        logits_c, targets_c, num_classes=num_classes, epsilon=epsilon,
        block_byte_budget=8 * num_classes * 4))
    ref_c = _reference(logits_c, targets_c, num_classes, epsilon)
    assert jnp.allclose(loss_c, ref_c, atol=1e-4, rtol=1e-5), (loss_c, ref_c)

    print("KERNEL_OK")
</pallas_src>

<mosaic_0001>
module attributes {stable_mosaic.version = 11 : i64} {
  func.func @_ce_label_smooth_kernel(%arg0: i32, %arg1: i32, %arg2: memref<8x1xi32, #tpu.memory_space<vmem>>, %arg3: memref<8x32xf32, #tpu.memory_space<vmem>>, %arg4: memref<1x8x128xf32, #tpu.memory_space<vmem>>) attributes {dimension_semantics = [#tpu.dimension_semantics<parallel>, #tpu.dimension_semantics<arbitrary>], iteration_bounds = array<i64: 1, 1>, scalar_prefetch = 0 : i64, scratch_operands = 0 : i64, tpu.core_type = #tpu.core_type<tc>, window_params = [{transform_indices = @transform_0, window_bounds = array<i64: 8, 1>}, {transform_indices = @transform_1, window_bounds = array<i64: 8, 32>}, {transform_indices = @transform_2, window_bounds = array<i64: 1, 8, 128>}]} {
    %c0_i32 = arith.constant 0 : i32
    %0 = arith.cmpi eq, %arg1, %c0_i32 : i32
    %1 = arith.extui %0 : i1 to i32
    %c0_i32_0 = arith.constant 0 : i32
    %2 = arith.cmpi ne, %1, %c0_i32_0 : i32
    scf.if %2 {
      %cst_17 = arith.constant 0.000000e+00 : f32
      %41 = vector.broadcast %cst_17 : f32 to vector<1x8x128xf32>
      %c0_18 = arith.constant 0 : index
      %c0_19 = arith.constant 0 : index
      %c0_20 = arith.constant 0 : index
      %42 = vector.load %arg4[%c0_18, %c0_19, %c0_20] : memref<1x8x128xf32, #tpu.memory_space<vmem>>, vector<1x8x128xf32>
      tpu.vector_store %arg4[%c0_18, %c0_19, %c0_20], %41 {strides = array<i32>} : memref<1x8x128xf32, #tpu.memory_space<vmem>>, vector<1x8x128xf32>,
    } else {
    }
    %c0 = arith.constant 0 : index
    %c0_1 = arith.constant 0 : index
    %3 = vector.load %arg3[%c0, %c0_1] : memref<8x32xf32, #tpu.memory_space<vmem>>, vector<8x32xf32>
    %cst = arith.constant dense<0xFF800000> : vector<8xf32>
    %4 = vector.multi_reduction <maximumf>, %3, %cst [1] : vector<8x32xf32> to vector<8xf32>
    %5 = vector.shape_cast %4 : vector<8xf32> to vector<8x1xf32>
    %6 = vector.broadcast %5 : vector<8x1xf32> to vector<8x32xf32>
    %7 = arith.subf %3, %6 : vector<8x32xf32>
    %8 = math.exp %7 : vector<8x32xf32>
    %cst_2 = arith.constant dense<0.000000e+00> : vector<8xf32>
    %9 = vector.multi_reduction <add>, %8, %cst_2 [1] : vector<8x32xf32> to vector<8xf32>
    %10 = vector.shape_cast %9 : vector<8xf32> to vector<8x1xf32>
    %11 = math.log %10 : vector<8x1xf32>
    %c0_3 = arith.constant 0 : index
    %c0_4 = arith.constant 0 : index
    %12 = vector.load %arg2[%c0_3, %c0_4] : memref<8x1xi32, #tpu.memory_space<vmem>>, vector<8x1xi32>
    %13 = tpu.iota {dimensions = array<i32: 1>} : vector<8x32xi32>
    %14 = vector.broadcast %12 : vector<8x1xi32> to vector<8x32xi32>
    %15 = arith.cmpi eq, %13, %14 : vector<8x32xi32>
    %cst_5 = arith.constant 0.903124988 : f32
    %cst_6 = arith.constant 3.125000e-03 : f32
    %16 = vector.broadcast %cst_5 : f32 to vector<8x32xf32>
    %17 = vector.broadcast %cst_6 : f32 to vector<8x32xf32>
    %18 = arith.select %15, %16, %17 : vector<8x32xi1>, vector<8x32xf32>
    %19 = arith.mulf %18, %7 : vector<8x32xf32>
    %cst_7 = arith.constant dense<0.000000e+00> : vector<8xf32>
    %20 = vector.multi_reduction <add>, %19, %cst_7 [1] : vector<8x32xf32> to vector<8xf32>
    %21 = vector.shape_cast %20 : vector<8xf32> to vector<8x1xf32>
    %22 = arith.subf %11, %21 : vector<8x1xf32>
    %c1_i32 = arith.constant 1 : i32
    %23 = arith.muli %arg0, %c1_i32 : i32
    %24 = arith.addi %23, %arg1 : i32
    %c8_i32 = arith.constant 8 : i32
    %25 = arith.muli %24, %c8_i32 : i32
    %26 = tpu.iota {dimensions = array<i32: 0>} : vector<8x1xi32>
    %27 = vector.broadcast %25 : i32 to vector<8x1xi32>
    %28 = arith.addi %27, %26 : vector<8x1xi32>
    %c8_i32_8 = arith.constant 8 : i32
    %29 = vector.broadcast %c8_i32_8 : i32 to vector<8x1xi32>
    %30 = arith.cmpi slt, %28, %29 : vector<8x1xi32>
    %cst_9 = arith.constant 0.000000e+00 : f32
    %31 = vector.broadcast %cst_9 : f32 to vector<8x1xf32>
    %32 = arith.select %30, %22, %31 : vector<8x1xi1>, vector<8x1xf32>
    %c0_10 = arith.constant 0 : index
    %c0_11 = arith.constant 0 : index
    %c0_12 = arith.constant 0 : index
    %33 = vector.load %arg4[%c0_10, %c0_11, %c0_12] : memref<1x8x128xf32, #tpu.memory_space<vmem>>, vector<1x8x128xf32>
    %34 = vector.shape_cast %32 : vector<8x1xf32> to vector<1x8x1xf32>
    %cst_13 = arith.constant dense<0.000000e+00> : vector<1xf32>
    %35 = vector.multi_reduction <add>, %34, %cst_13 [1, 2] : vector<1x8x1xf32> to vector<1xf32>
    %36 = vector.shape_cast %35 : vector<1xf32> to vector<1x1x1xf32>
    %37 = vector.extract %36[0, 0, 0] : f32 from vector<1x1x1xf32>
    %38 = vector.broadcast %37 : f32 to vector<1x8x128xf32>
    %39 = arith.addf %33, %38 : vector<1x8x128xf32>
    %c0_14 = arith.constant 0 : index
    %c0_15 = arith.constant 0 : index
    %c0_16 = arith.constant 0 : index
    %40 = vector.load %arg4[%c0_14, %c0_15, %c0_16] : memref<1x8x128xf32, #tpu.memory_space<vmem>>, vector<1x8x128xf32>
    tpu.vector_store %arg4[%c0_14, %c0_15, %c0_16], %39 {strides = array<i32>} : memref<1x8x128xf32, #tpu.memory_space<vmem>>, vector<1x8x128xf32>,
    return
  }
  func.func @transform_0(%arg0: i32, %arg1: i32) -> (i32, i32) {
    %c1_i32 = arith.constant 1 : i32
    %0 = arith.muli %arg0, %c1_i32 : i32
    %1 = arith.addi %0, %arg1 : i32
    %c0_i32 = arith.constant 0 : i32
    %2 = arith.minsi %1, %c0_i32 : i32
    %c0_i32_0 = arith.constant 0 : i32
    %c0_i32_1 = arith.constant 0 : i32
    return %2, %c0_i32_0 : i32, i32
  }
  func.func @transform_1(%arg0: i32, %arg1: i32) -> (i32, i32) {
    %c1_i32 = arith.constant 1 : i32
    %0 = arith.muli %arg0, %c1_i32 : i32
    %1 = arith.addi %0, %arg1 : i32
    %c0_i32 = arith.constant 0 : i32
    %2 = arith.minsi %1, %c0_i32 : i32
    %c0_i32_0 = arith.constant 0 : i32
    %c0_i32_1 = arith.constant 0 : i32
    return %2, %c0_i32_0 : i32, i32
  }
  func.func @transform_2(%arg0: i32, %arg1: i32) -> (i32, i32, i32) {
    %c0_i32 = arith.constant 0 : i32
    %c0_i32_0 = arith.constant 0 : i32
    %c0_i32_1 = arith.constant 0 : i32
    return %arg0, %c0_i32, %c0_i32_0 : i32, i32, i32
  }
}

</mosaic_0001>

<bundles_post_ra>
// kernel: tpu_custom_call.1
= control target key start
LH: loop header
LB: loop body
LE: loop exit
PB: predicated region body
PF: predicated region fallthrough
CT: control target
= control target key end

     0   :  { %vm72_vm0 = vcmask 261120   ;;  %s215_s0 = inlined_call_operand.vmem [shape: s32[8,1], index: 0, kind: input, shape index: {}]   ;;  %s216_s1 = inlined_call_operand.vmem [shape: f32[8,32], index: 1, kind: input, shape index: {}]   ;;  %s217_s2 = inlined_call_operand.hbm [shape: f32[1,8,128], index: 2, kind: output, shape index: {}]  }
   0x1   :  { %v71_v0 = vld [vmem:[%s216_s1] sm:$0xff] }
   0x2   :  { %7 = vsyncpa [#allocation3], 0  ;;  %v73_v1 = vsel %vm72_vm0, %v71_v0, -inf  ;;  %v185_v2 = vmov 0   ;;  %v84_v3 = vld [vmem:[%s215_s0] sm:$0xff]  ;;  %v85_v9 = vlaneseq  ;;  %vm106_vm2 = vcmask 7168  }
   0x3   :  { %154 = vset.pattern.permute.xlu0 %v185_v2  ;;  %v186_v12 = vmov 0.003125   ;;  %s187_s0 = smov [#allocation2]   ;;  %s127_s15 = sshll.u32 %s217_s2, 4  ;;  %s128_s15 = int_to_ptr.hbm [resolvable:$true] %s127_s15 }
   0x4   :  { %74 = vmax.xlane.f32.xlu0 %v73_v1  ;;  %v86_v10 = vand.u32 127, %v85_v9  ;;  %s125_s1 = sshll.u32 %s187_s0, 4  ;;  %s126_s1 = int_to_ptr.vmem [resolvable:$true] %s125_s1 }
  0x18   :  { %88 = vperm.xlu0 %154, %v84_v3  }
  0x77   :  { %v75_v4 = vpop.xlane.xlu0 %74 }
  0x78   :  { %v76_v5 = vsub.f32 %v71_v0, %v75_v4 }
  0x7a   :  { %v77_v6 = vmul.f32 1.442695, %v76_v5 }
  0x7c   :  { %155 = vpow2.f32 %v77_v6 }
  0x82   :  { %v156_v7 = vpop.eup %155 }
  0x83   :  { %v79_v8 = vsel %vm72_vm0, %v156_v7, 0.0 }
  0x84   :  { %80 = vadd.xlane.f32.xlu1 %v79_v8 }
  0x8a   :  { %v89_v11 = vpop.permute.xlu0 %88 }
  0x8b   :  { %vm90_vm1 = vcmp.eq.s32.totalorder %v86_v10, %v89_v11 }
  0x8c   :  { %v91_v13 = vsel %vm90_vm1, 0.903125, %v186_v12 }
  0x8d   :  { %v92_v14 = vmul.f32 %v91_v13, %v76_v5 }
  0x8f   :  { %v93_v15 = vsel %vm72_vm0, %v92_v14, 0.0 }
  0x90   :  { %94 = vadd.xlane.f32.xlu1 %v93_v15 }
  0xf7   :  { %v81_v16 = vpop.xlane.xlu1 %80 }
  0xf8   :  { %157 = vlog2.f32 %v81_v16 }
  0xfe   :  { %v158_v17 = vpop.eup %157 }
  0xff   :  { %v83_v18 = vmul.f32 0.6931472, %v158_v17 }
 0x103   :  { %v95_v19 = vpop.xlane.xlu1 %94 }
 0x104   :  { %v96_v20 = vsub.f32 %v83_v18, %v95_v19 }
 0x106   :  { %v107_v21 = vsel %vm106_vm2, %v96_v20, 0.0 }
 0x107   :  { %108 = vadd.xlane.f32.xlu2 %v107_v21 }
 0x17a   :  { %v109_v22 = vpop.xlane.xlu2 %108 }
 0x17b   :  { %v110_v23 = vrot.slane %v109_v22, 4 }
 0x17d   :  { %v111_v24 = vadd.f32 %v110_v23, %v109_v22 }
 0x17f   :  { %v112_v25 = vrot.slane %v111_v24, 2 }
 0x181   :  { %v113_v26 = vadd.f32 %v112_v25, %v111_v24 }
 0x183   :  { %v114_v27 = vrot.slane %v113_v26, 1 }
 0x185   :  { %v115_v28 = vadd.f32 %v114_v27, %v113_v26 }
 0x187   :  { %148 = vpush %v115_v28 }
 0x1b8   :  { %s149_s16 = spop %148 }
 0x1b9   :  { %v117_v29 = vstv %s149_s16 }
 0x1ba   :  { %119 = vst [vmem:[#allocation2] sm:$0xff] %v117_v29 }
 0x1bb   :  { %130 = dma.vmem_to_hbm [thread:$0]  %s126_s1, 128, %s128_s15, [#allocation3]  }
 0x1bc   :  { %183 = dma.done.wait [#allocation3], 128  }
 0x1bd   :  { %184 = vsyncadd [#allocation3], 4294967168 }
 0x1be   :  { %135 = vsyncpa [#allocation3], 1 }

</bundles_post_ra>
